<compile_context>
chip_gen: v7x
topology: tpu7x:2x2x1
jax: 0.10.0
libtpu: 0.0.40
codegen_flags: <defaults>
</compile_context>

<pallas_src>
import functools

import jax
import jax.numpy as jnp
from jax.experimental import pallas as pl
from jax.experimental.pallas import tpu as pltpu

H1 = 32
H2 = 64
LANES = 128       # padded lane width for hidden feature dims / packed weight buffer
ROW_ALIGN = 16    # row alignment of segments inside the packed weight buffer


def _round_up(x, m):
    return (x + m - 1) // m * m


def qnet_kernel(x_ref, w_ref, b_ref, out_ref):
    # Fused hot path: 3 MXU matmuls + bias adds + ReLUs, all resident in VMEM.
    sd_p = x_ref.shape[1]            # padded state_dim (static)
    ao = out_ref.shape[1]            # action_dim (static, < 128 -> narrow store)
    cdt = w_ref.dtype                # MXU compute dtype (bf16 or f32)

    x = x_ref[...].astype(cdt)                        # [bm, sd_p]
    w1 = w_ref[0:sd_p, :]                             # [sd_p, 128]
    w2 = w_ref[sd_p:sd_p + LANES, :]                  # [128, 128]
    w3 = w_ref[sd_p + LANES:sd_p + 2 * LANES, :]      # [128, 128]
    b1 = b_ref[0:1, :]                                # [1, 128] f32 (tile-aligned rows)
    b2 = b_ref[8:9, :]
    b3 = b_ref[16:17, :]

    h = jnp.dot(x, w1, preferred_element_type=jnp.float32) + b1
    h = jnp.maximum(h, 0.0)
    h = jnp.dot(h.astype(cdt), w2, preferred_element_type=jnp.float32) + b2
    h = jnp.maximum(h, 0.0)
    y = jnp.dot(h.astype(cdt), w3, preferred_element_type=jnp.float32) + b3
    out_ref[...] = y[:, :ao].astype(out_ref.dtype)    # only the valid action columns hit HBM


def pack_params(params, compute_dtype=jnp.bfloat16):
    """Pad feature dims to 128 lanes and pack weights/biases into single buffers.

    Weights are stored [in, out] (y = x @ W + b, equivalent to PyTorch x @ W.T + b).
    Returns (w_packed [sd_p+256, 128], b_packed [24, 128], action_dim).
    """
    w1, b1, w2, b2, w3, b3 = (params[k] for k in ("w1", "b1", "w2", "b2", "w3", "b3"))
    state_dim = w1.shape[0]
    action_dim = w3.shape[1]
    assert action_dim <= LANES and H1 <= LANES and H2 <= LANES
    sd_p = _round_up(max(state_dim, ROW_ALIGN), ROW_ALIGN)

    w1p = jnp.zeros((sd_p, LANES), jnp.float32).at[:state_dim, :H1].set(w1)
    w2p = jnp.zeros((LANES, LANES), jnp.float32).at[:H1, :H2].set(w2)
    w3p = jnp.zeros((LANES, LANES), jnp.float32).at[:H2, :action_dim].set(w3)
    w_packed = jnp.concatenate([w1p, w2p, w3p], axis=0).astype(compute_dtype)

    b_packed = jnp.zeros((24, LANES), jnp.float32)
    b_packed = b_packed.at[0, :H1].set(b1.reshape(-1))
    b_packed = b_packed.at[8, :H2].set(b2.reshape(-1))
    b_packed = b_packed.at[16, :action_dim].set(b3.reshape(-1))
    return w_packed, b_packed, action_dim


@functools.partial(jax.jit, static_argnames=("action_dim", "block_batch"))
def _qnet_forward(x, w_packed, b_packed, *, action_dim, block_batch):
    B, state_dim = x.shape
    sd_p = w_packed.shape[0] - 2 * LANES
    cdt_bytes = jnp.dtype(w_packed.dtype).itemsize

    assert block_batch % 16 == 0, "block_batch must be a multiple of 16 (sublane packing)"

    n_blocks = pl.cdiv(B, block_batch)
    Bp = n_blocks * block_batch

    xp = x
    if (Bp != B) or (sd_p != state_dim):
        xp = jnp.pad(xp, ((0, Bp - B), (0, sd_p - state_dim)))

    cost = pl.CostEstimate(
        flops=2 * B * (state_dim * H1 + H1 * H2 + H2 * action_dim),
        transcendentals=0,
        bytes_accessed=(Bp * sd_p * 4                 # x read (f32)
                        + Bp * action_dim * 4         # narrow output write (f32)
                        + w_packed.size * cdt_bytes + b_packed.size * 4),
    )

    out = pl.pallas_call(
        qnet_kernel,
        out_shape=jax.ShapeDtypeStruct((Bp, action_dim), jnp.float32),
        grid_spec=pltpu.PrefetchScalarGridSpec(
            num_scalar_prefetch=0,
            grid=(n_blocks,),
            in_specs=[
                pl.BlockSpec((block_batch, sd_p), lambda i: (i, 0)),    # batch-tiled x
                pl.BlockSpec(w_packed.shape, lambda i: (0, 0)),         # weights: resident
                pl.BlockSpec(b_packed.shape, lambda i: (0, 0)),         # biases: resident
            ],
            out_specs=pl.BlockSpec((block_batch, action_dim), lambda i: (i, 0)),
        ),
        compiler_params=pltpu.CompilerParams(
            dimension_semantics=("parallel",),      # batch axis shards across TCs on v7x
            vmem_limit_bytes=32 * 1024 * 1024,      # explicit, safe on v5e/v6e/v7x
        ),
        cost_estimate=cost,
    )(xp, w_packed, b_packed)

    # Slice away only the batch padding; the feature dim is already exact.
    return out[:B, :]


def qnet_forward(x, packed, block_batch=1024):
    """x: [B, state_dim] float32. packed: output of pack_params."""
    w_packed, b_packed, action_dim = packed
    B = x.shape[0]
    bb = min(block_batch, _round_up(B, 128))   # don't pay for padded rows on small batches
    return _qnet_forward(x, w_packed, b_packed, action_dim=action_dim, block_batch=bb)


def init_params(key, state_dim, action_dim):
    """PyTorch nn.Linear-style init (uniform +/- 1/sqrt(fan_in)); weights stored [in, out]."""
    ks = jax.random.split(key, 6)

    def linear(kw, kb, fan_in, fan_out):
        bound = 1.0 / jnp.sqrt(float(fan_in))
        w = jax.random.uniform(kw, (fan_in, fan_out), jnp.float32, -bound, bound)
        b = jax.random.uniform(kb, (fan_out,), jnp.float32, -bound, bound)
        return w, b

    w1, b1 = linear(ks[0], ks[1], state_dim, H1)
    w2, b2 = linear(ks[2], ks[3], H1, H2)
    w3, b3 = linear(ks[4], ks[5], H2, action_dim)
    return {"w1": w1, "b1": b1, "w2": w2, "b2": b2, "w3": w3, "b3": b3}


def qnet_reference(x, p):
    h = jnp.maximum(x @ p["w1"] + p["b1"], 0.0)
    h = jnp.maximum(h @ p["w2"] + p["b2"], 0.0)
    return h @ p["w3"] + p["b3"]


if __name__ == "__main__":
    key = jax.random.PRNGKey(0)
    k_param, k_x = jax.random.split(key)

    # Small demo shapes; batch is deliberately not a multiple of block_batch to
    # exercise the cdiv/padded-tail path, and gives a 2-step parallel grid.
    batch, state_dim, action_dim = 200, 16, 4
    params = init_params(k_param, state_dim, action_dim)
    x = jax.random.normal(k_x, (batch, state_dim), jnp.float32)
    ref = qnet_reference(x, params)

    # f32 compute path: tight check against the JAX reference.
    packed_f32 = pack_params(params, compute_dtype=jnp.float32)
    out_f32 = jax.block_until_ready(qnet_forward(x, packed_f32, block_batch=128))
    assert out_f32.shape == (batch, action_dim)
    assert jnp.allclose(out_f32, ref, atol=1e-5, rtol=1e-5), "f32 kernel mismatch vs reference"

    # bf16 fast path (default deployment config): looser tolerance for reduced-precision MXU inputs.
    packed_bf16 = pack_params(params, compute_dtype=jnp.bfloat16)
    out_bf16 = jax.block_until_ready(qnet_forward(x, packed_bf16, block_batch=128))
    assert out_bf16.shape == (batch, action_dim)
    assert jnp.allclose(out_bf16, ref, atol=5e-2, rtol=5e-2), "bf16 kernel mismatch vs reference"

    # Default (large-tile) config smoke test.
    out_def = jax.block_until_ready(qnet_forward(x, packed_bf16))
    assert out_def.shape == (batch, action_dim)

    print("KERNEL_OK")
</pallas_src>

<mosaic_0001>
module attributes {stable_mosaic.version = 11 : i64} {
  func.func @qnet_kernel(%arg0: i32, %arg1: memref<128x16xf32, #tpu.memory_space<vmem>>, %arg2: memref<272x128xf32, #tpu.memory_space<vmem>>, %arg3: memref<24x128xf32, #tpu.memory_space<vmem>>, %arg4: memref<128x4xf32, #tpu.memory_space<vmem>>) attributes {dimension_semantics = [#tpu.dimension_semantics<parallel>], iteration_bounds = array<i64: 2>, scalar_prefetch = 0 : i64, scratch_operands = 0 : i64, tpu.core_type = #tpu.core_type<tc>, window_params = [{transform_indices = @transform_0, window_bounds = array<i64: 128, 16>}, {pipeline_mode = #tpu.pipeline_mode<synchronous>, transform_indices = @transform_1, window_bounds = array<i64: 272, 128>}, {pipeline_mode = #tpu.pipeline_mode<synchronous>, transform_indices = @transform_2, window_bounds = array<i64: 24, 128>}, {transform_indices = @transform_3, window_bounds = array<i64: 128, 4>}]} {
    %c0 = arith.constant 0 : index
    %c0_0 = arith.constant 0 : index
    %0 = vector.load %arg1[%c0, %c0_0] : memref<128x16xf32, #tpu.memory_space<vmem>>, vector<128x16xf32>
    %c0_1 = arith.constant 0 : index
    %c0_2 = arith.constant 0 : index
    %1 = vector.load %arg2[%c0_1, %c0_2] : memref<272x128xf32, #tpu.memory_space<vmem>>, vector<16x128xf32>
    %c16 = arith.constant 16 : index
    %c0_3 = arith.constant 0 : index
    %2 = vector.load %arg2[%c16, %c0_3] : memref<272x128xf32, #tpu.memory_space<vmem>>, vector<128x128xf32>
    %c144 = arith.constant 144 : index
    %c0_4 = arith.constant 0 : index
    %3 = vector.load %arg2[%c144, %c0_4] : memref<272x128xf32, #tpu.memory_space<vmem>>, vector<128x128xf32>
    %c0_5 = arith.constant 0 : index
    %c0_6 = arith.constant 0 : index
    %4 = vector.load %arg3[%c0_5, %c0_6] : memref<24x128xf32, #tpu.memory_space<vmem>>, vector<1x128xf32>
    %c8 = arith.constant 8 : index
    %c0_7 = arith.constant 0 : index
    %5 = vector.load %arg3[%c8, %c0_7] : memref<24x128xf32, #tpu.memory_space<vmem>>, vector<1x128xf32>
    %c16_8 = arith.constant 16 : index
    %c0_9 = arith.constant 0 : index
    %6 = vector.load %arg3[%c16_8, %c0_9] : memref<24x128xf32, #tpu.memory_space<vmem>>, vector<1x128xf32>
    %cst = arith.constant dense<0.000000e+00> : vector<128x128xf32>
    %7 = tpu.matmul %0, %1, %cst {dimension_numbers = #tpu.dot_dimension_numbers<[1], [0], [0], [1], [0, 0, 1, 1], [], []>} : vector<128x16xf32>, vector<16x128xf32>, vector<128x128xf32> -> vector<128x128xf32>
    %8 = vector.broadcast %4 : vector<1x128xf32> to vector<128x128xf32>
    %9 = arith.addf %7, %8 : vector<128x128xf32>
    %cst_10 = arith.constant 0.000000e+00 : f32
    %10 = vector.broadcast %cst_10 : f32 to vector<128x128xf32>
    %11 = arith.maximumf %9, %10 : vector<128x128xf32>
    %cst_11 = arith.constant dense<0.000000e+00> : vector<128x128xf32>
    %12 = tpu.matmul %11, %2, %cst_11 {dimension_numbers = #tpu.dot_dimension_numbers<[1], [0], [0], [1], [0, 0, 1, 1], [], []>} : vector<128x128xf32>, vector<128x128xf32>, vector<128x128xf32> -> vector<128x128xf32>
    %13 = vector.broadcast %5 : vector<1x128xf32> to vector<128x128xf32>
    %14 = arith.addf %12, %13 : vector<128x128xf32>
    %cst_12 = arith.constant 0.000000e+00 : f32
    %15 = vector.broadcast %cst_12 : f32 to vector<128x128xf32>
    %16 = arith.maximumf %14, %15 : vector<128x128xf32>
    %cst_13 = arith.constant dense<0.000000e+00> : vector<128x128xf32>
    %17 = tpu.matmul %16, %3, %cst_13 {dimension_numbers = #tpu.dot_dimension_numbers<[1], [0], [0], [1], [0, 0, 1, 1], [], []>} : vector<128x128xf32>, vector<128x128xf32>, vector<128x128xf32> -> vector<128x128xf32>
    %18 = vector.broadcast %6 : vector<1x128xf32> to vector<128x128xf32>
    %19 = arith.addf %17, %18 : vector<128x128xf32>
    %20 = vector.extract_strided_slice %19 {offsets = [0, 0], sizes = [128, 4], strides = [1, 1]} : vector<128x128xf32> to vector<128x4xf32>
    %c0_14 = arith.constant 0 : index
    %c0_15 = arith.constant 0 : index
    %21 = vector.load %arg4[%c0_14, %c0_15] : memref<128x4xf32, #tpu.memory_space<vmem>>, vector<128x4xf32>
    tpu.vector_store %arg4[%c0_14, %c0_15], %20 {strides = array<i32>} : memref<128x4xf32, #tpu.memory_space<vmem>>, vector<128x4xf32>,
    return
  }
  func.func @transform_0(%arg0: i32) -> (i32, i32) {
    %c0_i32 = arith.constant 0 : i32
    %c0_i32_0 = arith.constant 0 : i32
    return %arg0, %c0_i32 : i32, i32
  }
  func.func @transform_1(%arg0: i32) -> (i32, i32) {
    %c0_i32 = arith.constant 0 : i32
    %c0_i32_0 = arith.constant 0 : i32
    %c0_i32_1 = arith.constant 0 : i32
    return %c0_i32, %c0_i32_0 : i32, i32
  }
  func.func @transform_2(%arg0: i32) -> (i32, i32) {
    %c0_i32 = arith.constant 0 : i32
    %c0_i32_0 = arith.constant 0 : i32
    %c0_i32_1 = arith.constant 0 : i32
    return %c0_i32, %c0_i32_0 : i32, i32
  }
  func.func @transform_3(%arg0: i32) -> (i32, i32) {
    %c0_i32 = arith.constant 0 : i32
    %c0_i32_0 = arith.constant 0 : i32
    return %arg0, %c0_i32 : i32, i32
  }
}

</mosaic_0001>

<bundles_post_ra>
// kernel: _qnet_forward.1
= control target key start
LH: loop header
LB: loop body
LE: loop exit
PB: predicated region body
PF: predicated region fallthrough
CT: control target
= control target key end

     0   :  { %s1184_s12 = smov 0   ;;  %s1387_s0 = inlined_call_operand.vmem [shape: f32[256,16], index: 0, kind: input, shape index: {}]   ;;  %s1388_s1 = inlined_call_operand.vmem [shape: f32[272,128], index: 1, kind: input, shape index: {}]   ;;  %s1389_s2 = inlined_call_operand.vmem [shape: f32[24,128], index: 2, kind: input, shape index: {}]   ;;  %s1390_s3 = inlined_call_operand.vmem [shape: f32[256,4], index: 3, kind: output, shape index: {}]  }
   0x1 LB: > { %s828_s13 = sadd.s32 4294967295, %s1162_s12   ;;  %p832_p0 = scmp.ge.s32.totalorder %s1162_s12, 1  ;;  %s1162_s12 = sphi %s1184_s12, %s13_s12  }
   0x2   : > { %p138_p1 = scmp.lt.s32.totalorder %s1162_s12, 3 }
   0x4   : > { %p139_p2 = pnand %p832_p0, %p138_p1 }
   0x5   : > { %v190_v0 = vld [vmem:[%s1388_s1] sm:$0xff] (!%p139_p2)  ;;  %v191_v1 = vld [vmem:[%s1388_s1 + $0x8] sm:$0xff] (!%p139_p2)  ;;  %s833_s18 = sshll.u32 (!%p139_p2), %s828_s13, 4  ;;  %v192_v2 = vld [vmem:[%s1388_s1 + $0x10] sm:$0xff] (!%p139_p2)  ;;  %vm231_vm0 = vcmask (!%p139_p2), 130048   ;;  %vm755_vm1 = vcmask (!%p139_p2), 31744  }
   0x6   : > { %142 = sbr.rel (%p139_p2) target bundleno = 698 (0x2ba), region = 32  ;;  %v1080_v3 = vpack.c.bf16 (!%p139_p2), %v191_v1, %v190_v0  ;;  %p163_p3 = scmp.lt.s32.totalorder (!%p139_p2), %s833_s18, 31  ;;  %v193_v4 = vld [vmem:[%s1388_s1 + $0x18] sm:$0xff] (!%p139_p2)  ;;  %v194_v5 = vld [vmem:[%s1388_s1 + $0x20] sm:$0xff] (!%p139_p2)  ;;  %v195_v6 = vld [vmem:[%s1388_s1 + $0x28] sm:$0xff] (!%p139_p2) }
   0x7   : > { %v1084_v7 = vpack.c.bf16 (!%p139_p2), %v193_v4, %v192_v2  ;;  %v1088_v8 = vpack.c.bf16 (!%p139_p2), %v195_v6, %v194_v5  ;;  %v196_v9 = vld [vmem:[%s1388_s1 + $0x30] sm:$0xff] (!%p139_p2)  ;;  %v197_v10 = vld [vmem:[%s1388_s1 + $0x38] sm:$0xff] (!%p139_p2)  ;;  %v198_v12 = vld [vmem:[%s1388_s1 + $0x40] sm:$0xff] (!%p139_p2) }
   0x8   : > { %1081 = vmatprep.subr.bf16.mxu0 (!%p139_p2), %v1080_v3  ;;  %v1092_v11 = vpack.c.bf16 (!%p139_p2), %v197_v10, %v196_v9  ;;  %v199_v13 = vld [vmem:[%s1388_s1 + $0x48] sm:$0xff] (!%p139_p2)  ;;  %v200_v20 = vld [vmem:[%s1388_s1 + $0x50] sm:$0xff] (!%p139_p2)  ;;  %v201_v21 = vld [vmem:[%s1388_s1 + $0x58] sm:$0xff] (!%p139_p2) }
   0x9   : > { %1083 = vmatpush3.bf16.msra.mxu0 (!%p139_p2), %v1080_v3  ;;  %1085 = vmatprep.subr.bf16.mxu1 (!%p139_p2), %v1084_v7  ;;  %v1096_v18 = vpack.c.bf16 (!%p139_p2), %v199_v13, %v198_v12  ;;  %v1100_v23 = vpack.c.bf16 (!%p139_p2), %v201_v21, %v200_v20  ;;  %v202_v25 = vld [vmem:[%s1388_s1 + $0x60] sm:$0xff] (!%p139_p2)  ;;  %v203_v26 = vld [vmem:[%s1388_s1 + $0x68] sm:$0xff] (!%p139_p2)  ;;  %v204_v30 = vld [vmem:[%s1388_s1 + $0x70] sm:$0xff] (!%p139_p2) }
   0xa   : > { %1087 = vmatpush3.bf16.msra.mxu1 (!%p139_p2), %v1084_v7  ;;  %v1104_v28 = vpack.c.bf16 (!%p139_p2), %v203_v26, %v202_v25  ;;  %v205_v31 = vld [vmem:[%s1388_s1 + $0x78] sm:$0xff] (!%p139_p2)  ;;  %v206_v40 = vld [vmem:[%s1388_s1 + $0x80] sm:$0xff] (!%p139_p2)  ;;  %v207_v41 = vld [vmem:[%s1388_s1 + $0x88] sm:$0xff] (!%p139_p2) }
   0xb   : > { %1089 = vmatprep.subr.bf16.mxu1 (!%p139_p2), %v1088_v8  ;;  %v1108_v33 = vpack.c.bf16 (!%p139_p2), %v205_v31, %v204_v30  ;;  %v1112_v42 = vpack.c.bf16 (!%p139_p2), %v207_v41, %v206_v40  ;;  %v208_v43 = vld [vmem:[%s1388_s1 + $0x90] sm:$0xff] (!%p139_p2)  ;;  %v209_v44 = vld [vmem:[%s1388_s1 + $0x98] sm:$0xff] (!%p139_p2)  ;;  %v210_v45 = vld [vmem:[%s1388_s1 + $0xa0] sm:$0xff] (!%p139_p2) }
   0xc   : > { %v1116_v46 = vpack.c.bf16 (!%p139_p2), %v209_v44, %v208_v43  ;;  %v211_v47 = vld [vmem:[%s1388_s1 + $0xa8] sm:$0xff] (!%p139_p2)  ;;  %v212_v49 = vld [vmem:[%s1388_s1 + $0xb0] sm:$0xff] (!%p139_p2)  ;;  %v213_v50 = vld [vmem:[%s1388_s1 + $0xb8] sm:$0xff] (!%p139_p2) }
   0xd   : > { %s1392_s18 = smov (!%p163_p3, %s833_s18), 31  ;;  %v1120_v48 = vpack.c.bf16 %v211_v47, %v210_v45  ;;  %v1124_v51 = vpack.c.bf16 %v213_v50, %v212_v49  ;;  %v214_v52 = vld [vmem:[%s1388_s1 + $0xc0] sm:$0xff]  ;;  %v215_v53 = vld [vmem:[%s1388_s1 + $0xc8] sm:$0xff]  ;;  %v216_v55 = vld [vmem:[%s1388_s1 + $0xd0] sm:$0xff] }
   0xe   : > { %s834_s4 = sshll.u32 %s1392_s18, 3  ;;  %1091 = vmatpush3.bf16.msra.mxu1 %v1088_v8  ;;  %1117 = vmatprep.subr.bf16.mxu0 %v1116_v46  ;;  %v1128_v54 = vpack.c.bf16 %v215_v53, %v214_v52  ;;  %v217_v56 = vld [vmem:[%s1388_s1 + $0xd8] sm:$0xff]  ;;  %v218_v58 = vld [vmem:[%s1388_s1 + $0xe0] sm:$0xff]  ;;  %v219_v59 = vld [vmem:[%s1388_s1 + $0xe8] sm:$0xff] }
   0xf   : > { %s1224_s7 = scalar_lea.vmem %s1387_s0, %s834_s4  ;;  %1093 = vmatprep.subr.bf16.mxu1 %v1092_v11  ;;  %v1132_v57 = vpack.c.bf16 %v217_v56, %v216_v55  ;;  %v1136_v60 = vpack.c.bf16 %v219_v59, %v218_v58  ;;  %v220_v61 = vld [vmem:[%s1388_s1 + $0xf0] sm:$0xff]  ;;  %v221_v62 = vld [vmem:[%s1388_s1 + $0xf8] sm:$0xff]  ;;  %v837_v0 = vld [vmem:[%s1389_s2] ss:$0 sm:$0xff]  ;;  %s1350_s22 = scalar_lea.vmem %s1390_s3, %s834_s4 }
  0x10   : > { %v174_v14 = vld [vmem:[%s1224_s7] sm:$0xff]  ;;  %v175_v15 = vld [vmem:[%s1224_s7 + $0x8] sm:$0xff]  ;;  %v176_v16 = vld [vmem:[%s1224_s7 + $0x10] sm:$0xff]  ;;  %v1140_v63 = vpack.c.bf16 %v221_v62, %v220_v61 }
  0x11   : > { %944 = vmatprep.mubr.msk.f32.mxu0 %vm231_vm0, %v174_v14  ;;  %v177_v17 = vld [vmem:[%s1224_s7 + $0x18] sm:$0xff]  ;;  %v178_v19 = vld [vmem:[%s1224_s7 + $0x20] sm:$0xff]  ;;  %v179_v22 = vld [vmem:[%s1224_s7 + $0x28] sm:$0xff] }
  0x12   : > { %945 = vmatmul.mubr.msk.f32.vlgmr.msra.gmra.mrb[0].mxu0 %vm231_vm0, %v175_v15  ;;  %1095 = vmatpush3.bf16.msra.mxu1 %v1092_v11  ;;  %v180_v24 = vld [vmem:[%s1224_s7 + $0x30] sm:$0xff]  ;;  %v181_v27 = vld [vmem:[%s1224_s7 + $0x38] sm:$0xff]  ;;  %v182_v29 = vld [vmem:[%s1224_s7 + $0x40] sm:$0xff] }
  0x13   : > { %947 = vmatprep.mubr.msk.f32.mxu0 %vm231_vm0, %v176_v16  ;;  %1097 = vmatprep.subr.bf16.mxu1 %v1096_v18  ;;  %v183_v32 = vld [vmem:[%s1224_s7 + $0x48] sm:$0xff]  ;;  %v184_v34 = vld [vmem:[%s1224_s7 + $0x50] sm:$0xff]  ;;  %v185_v35 = vld [vmem:[%s1224_s7 + $0x58] sm:$0xff] }
  0x14   : > { %v186_v36 = vld [vmem:[%s1224_s7 + $0x60] sm:$0xff]  ;;  %v187_v37 = vld [vmem:[%s1224_s7 + $0x68] sm:$0xff]  ;;  %v188_v38 = vld [vmem:[%s1224_s7 + $0x70] sm:$0xff]  ;;  %1119 = vmatpush3.bf16.msra.mxu0 %v1116_v46 }
  0x15   : > { %v189_v39 = vld [vmem:[%s1224_s7 + $0x78] sm:$0xff]  ;;  %1121 = vmatprep.subr.bf16.mxu0 %v1120_v48  ;;  %v222_v49 = vld [vmem:[%s1388_s1 + $0x100] sm:$0xff]  ;;  %v223_v50 = vld [vmem:[%s1388_s1 + $0x108] sm:$0xff] }
  0x16   : > { %948 = vmatmul.mubr.msk.f32.gmra.mrb[2].mxu0 %vm231_vm0, %v177_v17  ;;  %1099 = vmatpush3.bf16.msra.mxu1 %v1096_v18  ;;  %v854_v52 = vld [vmem:[%s1389_s2 + $0x8] ss:$0 sm:$0xff] }
  0x17   : > { %950 = vmatprep.mubr.msk.f32.mxu0 %vm231_vm0, %v178_v19  ;;  %1101 = vmatprep.subr.bf16.mxu1 %v1100_v23 }
  0x18   : > { %1123 = vmatpush3.bf16.msra.mxu0 %v1120_v48 }
  0x19   : > { %1125 = vmatprep.subr.bf16.mxu0 %v1124_v51 }
  0x1a   : > { %951 = vmatmul.mubr.msk.f32.gmra.mrb[4].mxu0 %vm231_vm0, %v179_v22  ;;  %1103 = vmatpush3.bf16.msra.mxu1 %v1100_v23 }
  0x1b   : > { %953 = vmatprep.mubr.msk.f32.mxu0 %vm231_vm0, %v180_v24  ;;  %1105 = vmatprep.subr.bf16.mxu1 %v1104_v28 }
  0x1c   : > { %1127 = vmatpush3.bf16.msra.mxu0 %v1124_v51  ;;  %v1144_v51 = vpack.c.bf16 %v223_v50, %v222_v49 }
  0x1d   : > { %1129 = vmatprep.subr.bf16.mxu0 %v1128_v54 }
  0x1e   : > { %954 = vmatmul.mubr.msk.f32.gmra.mrb[6].mxu0 %vm231_vm0, %v181_v27  ;;  %1107 = vmatpush3.bf16.msra.mxu1 %v1104_v28 }
  0x1f   : > { %956 = vmatprep.mubr.msk.f32.mxu0 %vm231_vm0, %v182_v29  ;;  %1109 = vmatprep.subr.bf16.mxu1 %v1108_v33 }
  0x20   : > { %1131 = vmatpush3.bf16.msra.mxu0 %v1128_v54 }
  0x21   : > { %1133 = vmatprep.subr.bf16.mxu0 %v1132_v57 }
  0x22   : > { %957 = vmatmul.mubr.msk.f32.gmra.mrb[8].mxu0 %vm231_vm0, %v183_v32  ;;  %1111 = vmatpush3.bf16.msra.mxu1 %v1108_v33 }
  0x23   : > { %959 = vmatprep.mubr.msk.f32.mxu0 %vm231_vm0, %v184_v34  ;;  %1113 = vmatprep.subr.bf16.mxu1 %v1112_v42 }
  0x24   : > { %1135 = vmatpush3.bf16.msra.mxu0 %v1132_v57 }
  0x25   : > { %1137 = vmatprep.subr.bf16.mxu0 %v1136_v60 }
  0x26   : > { %960 = vmatmul.mubr.msk.f32.gmra.mrb[10].mxu0 %vm231_vm0, %v185_v35  ;;  %1115 = vmatpush3.bf16.msra.mxu1 %v1112_v42 }
  0x27   : > { %962 = vmatprep.mubr.msk.f32.mxu0 %vm231_vm0, %v186_v36 }
  0x28   : > { %1139 = vmatpush3.bf16.msra.mxu0 %v1136_v60 }
  0x29   : > { %1141 = vmatprep.subr.bf16.mxu0 %v1140_v63 }
  0x2a   : > { %963 = vmatmul.mubr.msk.f32.gmra.mrb[12].mxu0 %vm231_vm0, %v187_v37 }
  0x2b   : > { %965 = vmatprep.mubr.msk.f32.mxu0 %vm231_vm0, %v188_v38 }
  0x2c   : > { %1143 = vmatpush3.bf16.msra.mxu0 %v1140_v63 }
  0x2d   : > { %1145 = vmatprep.subr.bf16.mxu0 %v1144_v51 }
  0x2e   : > { %966 = vmatmul.mubr.msk.f32.gmra.mrb[14].mxu0 %vm231_vm0, %v189_v39 }
  0x30   : > { %1147 = vmatpush3.bf16.msra.mxu0 %v1144_v51 }
  0xe5   : > { %v946_v1 = vpop.f32.mrb[0].mxu0 }
  0xe6   : > { %v352_v2 = vadd.f32 %v946_v1, %v837_v0  ;;  %v346_v3 = vpop.f32.mrb[1].mxu0 }
  0xe7   : > { %v347_v4 = vadd.f32 %v837_v0, %v346_v3 }
  0xe8   : > { %v426_v7 = vmax.f32 %v352_v2, 0.0 }
  0xe9   : > { %v949_v5 = vpop.f32.mrb[2].mxu0  ;;  %v425_v6 = vmax.f32 %v347_v4, 0.0 }
  0xea   : > { %v362_v8 = vadd.f32 %v949_v5, %v837_v0  ;;  %v356_v9 = vpop.f32.mrb[3].mxu0 }
  0xeb   : > { %v357_v10 = vadd.f32 %v837_v0, %v356_v9  ;;  %1000 = vmatprep.mubr.f32.mxu1 %v425_v6 }
  0xec   : > { %1001 = vmatmul.mubr.f32.vlgmr.msra.gmra.mrb[0].mxu1 %v426_v7  ;;  %v428_v13 = vmax.f32 %v362_v8, 0.0 }
  0xed   : > { %v427_v11 = vmax.f32 %v357_v10, 0.0  ;;  %v952_v12 = vpop.f32.mrb[4].mxu0 }
  0xee   : > { %v372_v14 = vadd.f32 %v952_v12, %v837_v0  ;;  %v366_v15 = vpop.f32.mrb[5].mxu0 }
  0xef   : > { %v367_v16 = vadd.f32 %v837_v0, %v366_v15  ;;  %1003 = vmatprep.mubr.f32.mxu1 %v427_v11 }
  0xf0   : > { %1004 = vmatmul.mubr.f32.gmra.mrb[2].mxu1 %v428_v13  ;;  %v430_v19 = vmax.f32 %v372_v14, 0.0 }
  0xf1   : > { %v429_v17 = vmax.f32 %v367_v16, 0.0  ;;  %v955_v18 = vpop.f32.mrb[6].mxu0 }
  0xf2   : > { %v382_v20 = vadd.f32 %v955_v18, %v837_v0  ;;  %v376_v21 = vpop.f32.mrb[7].mxu0 }
  0xf3   : > { %v377_v22 = vadd.f32 %v837_v0, %v376_v21  ;;  %1006 = vmatprep.mubr.f32.mxu1 %v429_v17 }
  0xf4   : > { %1007 = vmatmul.mubr.f32.gmra.mrb[4].mxu1 %v430_v19  ;;  %v432_v25 = vmax.f32 %v382_v20, 0.0 }
  0xf5   : > { %v431_v23 = vmax.f32 %v377_v22, 0.0  ;;  %v958_v24 = vpop.f32.mrb[8].mxu0 }
  0xf6   : > { %v392_v26 = vadd.f32 %v958_v24, %v837_v0  ;;  %v386_v27 = vpop.f32.mrb[9].mxu0 }
  0xf7   : > { %v387_v28 = vadd.f32 %v837_v0, %v386_v27  ;;  %1009 = vmatprep.mubr.f32.mxu1 %v431_v23 }
  0xf8   : > { %1010 = vmatmul.mubr.f32.gmra.mrb[6].mxu1 %v432_v25  ;;  %v434_v31 = vmax.f32 %v392_v26, 0.0 }
  0xf9   : > { %v433_v29 = vmax.f32 %v387_v28, 0.0  ;;  %v961_v30 = vpop.f32.mrb[10].mxu0 }
  0xfa   : > { %v402_v32 = vadd.f32 %v961_v30, %v837_v0  ;;  %v396_v33 = vpop.f32.mrb[11].mxu0 }
  0xfb   : > { %v397_v34 = vadd.f32 %v837_v0, %v396_v33  ;;  %1012 = vmatprep.mubr.f32.mxu1 %v433_v29 }
  0xfc   : > { %1013 = vmatmul.mubr.f32.gmra.mrb[8].mxu1 %v434_v31  ;;  %v436_v37 = vmax.f32 %v402_v32, 0.0 }
  0xfd   : > { %v435_v35 = vmax.f32 %v397_v34, 0.0  ;;  %v964_v36 = vpop.f32.mrb[12].mxu0 }
  0xfe   : > { %v412_v38 = vadd.f32 %v964_v36, %v837_v0  ;;  %v406_v39 = vpop.f32.mrb[13].mxu0 }
  0xff   : > { %v407_v40 = vadd.f32 %v837_v0, %v406_v39  ;;  %1015 = vmatprep.mubr.f32.mxu1 %v435_v35 }
 0x100   : > { %1016 = vmatmul.mubr.f32.gmra.mrb[10].mxu1 %v436_v37  ;;  %v438_v43 = vmax.f32 %v412_v38, 0.0  ;;  %v855_v37 = vld [vmem:[%s1389_s2 + $0x10] ss:$0 sm:$0xff] }
 0x101   : > { %v437_v41 = vmax.f32 %v407_v40, 0.0  ;;  %v967_v42 = vpop.f32.mrb[14].mxu0 }
 0x102   : > { %v422_v44 = vadd.f32 %v967_v42, %v837_v0  ;;  %v416_v45 = vpop.f32.mrb[15].mxu0 }
 0x103   : > { %v417_v46 = vadd.f32 %v837_v0, %v416_v45  ;;  %1018 = vmatprep.mubr.f32.mxu1 %v437_v41 }
 0x104   : > { %1019 = vmatmul.mubr.f32.gmra.mrb[12].mxu1 %v438_v43  ;;  %v440_v48 = vmax.f32 %v422_v44, 0.0 }
 0x105   : > { %v439_v47 = vmax.f32 %v417_v46, 0.0 }
 0x107   : > { %1021 = vmatprep.mubr.f32.mxu1 %v439_v47 }
 0x108   : > { %1022 = vmatmul.mubr.f32.gmra.mrb[14].mxu1 %v440_v48 }
 0x1bf   : > { %v1002_v53 = vpop.f32.mrb[0].mxu1 }
 0x1c0   : > { %v517_v54 = vadd.f32 %v1002_v53, %v854_v52  ;;  %v511_v55 = vpop.f32.mrb[1].mxu1 }
 0x1c1   : > { %v512_v56 = vadd.f32 %v854_v52, %v511_v55 }
 0x1c2   : > { %v591_v59 = vmax.f32 %v517_v54, 0.0 }
 0x1c3   : > { %v590_v57 = vmax.f32 %v512_v56, 0.0  ;;  %v1005_v58 = vpop.f32.mrb[2].mxu1 }
 0x1c4   : > { %v527_v60 = vadd.f32 %v1005_v58, %v854_v52  ;;  %v521_v61 = vpop.f32.mrb[3].mxu1 }
 0x1c5   : > { %v522_v62 = vadd.f32 %v854_v52, %v521_v61  ;;  %1056 = vmatprep.mubr.f32.mxu0 %v590_v57 }
 0x1c6   : > { %1057 = vmatmul.mubr.f32.vlgmr.msra.gmra.mrb[16].mxu0 %v591_v59  ;;  %v593_v1 = vmax.f32 %v527_v60, 0.0 }
 0x1c7   : > { %v592_v63 = vmax.f32 %v522_v62, 0.0  ;;  %v1008_v0 = vpop.f32.mrb[4].mxu1 }
 0x1c8   : > { %v537_v2 = vadd.f32 %v1008_v0, %v854_v52  ;;  %v531_v3 = vpop.f32.mrb[5].mxu1 }
 0x1c9   : > { %v532_v4 = vadd.f32 %v854_v52, %v531_v3  ;;  %1059 = vmatprep.mubr.f32.mxu0 %v592_v63 }
 0x1ca   : > { %1060 = vmatmul.mubr.f32.gmra.mrb[18].mxu0 %v593_v1  ;;  %v595_v7 = vmax.f32 %v537_v2, 0.0 }
 0x1cb   : > { %v594_v5 = vmax.f32 %v532_v4, 0.0  ;;  %v1011_v6 = vpop.f32.mrb[6].mxu1 }
 0x1cc   : > { %v547_v8 = vadd.f32 %v1011_v6, %v854_v52  ;;  %v541_v9 = vpop.f32.mrb[7].mxu1 }
 0x1cd   : > { %v542_v10 = vadd.f32 %v854_v52, %v541_v9  ;;  %1062 = vmatprep.mubr.f32.mxu0 %v594_v5 }
 0x1ce   : > { %1063 = vmatmul.mubr.f32.gmra.mrb[20].mxu0 %v595_v7  ;;  %v597_v13 = vmax.f32 %v547_v8, 0.0 }
 0x1cf   : > { %v596_v11 = vmax.f32 %v542_v10, 0.0  ;;  %v1014_v12 = vpop.f32.mrb[8].mxu1 }
 0x1d0   : > { %v557_v14 = vadd.f32 %v1014_v12, %v854_v52  ;;  %v551_v15 = vpop.f32.mrb[9].mxu1 }
 0x1d1   : > { %v552_v16 = vadd.f32 %v854_v52, %v551_v15  ;;  %1065 = vmatprep.mubr.f32.mxu0 %v596_v11 }
 0x1d2   : > { %1066 = vmatmul.mubr.f32.gmra.mrb[22].mxu0 %v597_v13  ;;  %v599_v19 = vmax.f32 %v557_v14, 0.0 }
 0x1d3   : > { %v598_v17 = vmax.f32 %v552_v16, 0.0  ;;  %v1017_v18 = vpop.f32.mrb[10].mxu1 }
 0x1d4   : > { %v567_v20 = vadd.f32 %v1017_v18, %v854_v52  ;;  %v561_v21 = vpop.f32.mrb[11].mxu1 }
 0x1d5   : > { %v562_v22 = vadd.f32 %v854_v52, %v561_v21  ;;  %1068 = vmatprep.mubr.f32.mxu0 %v598_v17 }
 0x1d6   : > { %1069 = vmatmul.mubr.f32.gmra.mrb[24].mxu0 %v599_v19  ;;  %v601_v25 = vmax.f32 %v567_v20, 0.0 }
 0x1d7   : > { %v600_v23 = vmax.f32 %v562_v22, 0.0  ;;  %v1020_v24 = vpop.f32.mrb[12].mxu1 }
 0x1d8   : > { %v577_v26 = vadd.f32 %v1020_v24, %v854_v52  ;;  %v571_v27 = vpop.f32.mrb[13].mxu1 }
 0x1d9   : > { %v572_v28 = vadd.f32 %v854_v52, %v571_v27  ;;  %1071 = vmatprep.mubr.f32.mxu0 %v600_v23 }
 0x1da   : > { %1072 = vmatmul.mubr.f32.gmra.mrb[26].mxu0 %v601_v25  ;;  %v603_v31 = vmax.f32 %v577_v26, 0.0 }
 0x1db   : > { %v602_v29 = vmax.f32 %v572_v28, 0.0  ;;  %v1023_v30 = vpop.f32.mrb[14].mxu1 }
 0x1dc   : > { %v587_v32 = vadd.f32 %v1023_v30, %v854_v52  ;;  %v581_v33 = vpop.f32.mrb[15].mxu1 }
 0x1dd   : > { %v582_v34 = vadd.f32 %v854_v52, %v581_v33  ;;  %1074 = vmatprep.mubr.f32.mxu0 %v602_v29 }
 0x1de   : > { %1075 = vmatmul.mubr.f32.gmra.mrb[28].mxu0 %v603_v31  ;;  %v605_v36 = vmax.f32 %v587_v32, 0.0 }
 0x1df   : > { %v604_v35 = vmax.f32 %v582_v34, 0.0 }
 0x1e1   : > { %1077 = vmatprep.mubr.f32.mxu0 %v604_v35 }
 0x1e2   : > { %1078 = vmatmul.mubr.f32.gmra.mrb[30].mxu0 %v605_v36 }
 0x299   : > { %v1058_v38 = vpop.f32.mrb[16].mxu0 }
 0x29a   : > { %v682_v39 = vadd.f32 %v1058_v38, %v855_v37  ;;  %v676_v40 = vpop.f32.mrb[17].mxu0 }
 0x29b   : > { %v677_v41 = vadd.f32 %v855_v37, %v676_v40 }
 0x29c   : > { %757 = vst.msk [vmem:[%s1350_s22 + $0x8] sm:$0xff] %vm755_vm1, %v682_v39 }
 0x29d   : > { %756 = vst.msk [vmem:[%s1350_s22] sm:$0xff] %vm755_vm1, %v677_v41  ;;  %v1061_v42 = vpop.f32.mrb[18].mxu0 }
 0x29e   : > { %v692_v43 = vadd.f32 %v1061_v42, %v855_v37  ;;  %v686_v44 = vpop.f32.mrb[19].mxu0 }
 0x29f   : > { %v687_v45 = vadd.f32 %v855_v37, %v686_v44 }
 0x2a0   : > { %759 = vst.msk [vmem:[%s1350_s22 + $0x18] sm:$0xff] %vm755_vm1, %v692_v43 }
 0x2a1   : > { %758 = vst.msk [vmem:[%s1350_s22 + $0x10] sm:$0xff] %vm755_vm1, %v687_v45  ;;  %v1064_v46 = vpop.f32.mrb[20].mxu0 }
 0x2a2   : > { %v702_v47 = vadd.f32 %v1064_v46, %v855_v37  ;;  %v696_v48 = vpop.f32.mrb[21].mxu0 }
 0x2a3   : > { %v697_v49 = vadd.f32 %v855_v37, %v696_v48 }
 0x2a4   : > { %761 = vst.msk [vmem:[%s1350_s22 + $0x28] sm:$0xff] %vm755_vm1, %v702_v47 }
 0x2a5   : > { %760 = vst.msk [vmem:[%s1350_s22 + $0x20] sm:$0xff] %vm755_vm1, %v697_v49  ;;  %v1067_v50 = vpop.f32.mrb[22].mxu0 }
 0x2a6   : > { %v712_v51 = vadd.f32 %v1067_v50, %v855_v37  ;;  %v706_v52 = vpop.f32.mrb[23].mxu0 }
 0x2a7   : > { %v707_v53 = vadd.f32 %v855_v37, %v706_v52 }
 0x2a8   : > { %763 = vst.msk [vmem:[%s1350_s22 + $0x38] sm:$0xff] %vm755_vm1, %v712_v51 }
 0x2a9   : > { %762 = vst.msk [vmem:[%s1350_s22 + $0x30] sm:$0xff] %vm755_vm1, %v707_v53  ;;  %v1070_v54 = vpop.f32.mrb[24].mxu0 }
 0x2aa   : > { %v722_v55 = vadd.f32 %v1070_v54, %v855_v37  ;;  %v716_v56 = vpop.f32.mrb[25].mxu0 }
 0x2ab   : > { %v717_v57 = vadd.f32 %v855_v37, %v716_v56 }
 0x2ac   : > { %765 = vst.msk [vmem:[%s1350_s22 + $0x48] sm:$0xff] %vm755_vm1, %v722_v55 }
 0x2ad   : > { %764 = vst.msk [vmem:[%s1350_s22 + $0x40] sm:$0xff] %vm755_vm1, %v717_v57  ;;  %v1073_v58 = vpop.f32.mrb[26].mxu0 }
 0x2ae   : > { %v732_v59 = vadd.f32 %v1073_v58, %v855_v37  ;;  %v726_v60 = vpop.f32.mrb[27].mxu0 }
 0x2af   : > { %v727_v61 = vadd.f32 %v855_v37, %v726_v60 }
 0x2b0   : > { %767 = vst.msk [vmem:[%s1350_s22 + $0x58] sm:$0xff] %vm755_vm1, %v732_v59 }
 0x2b1   : > { %766 = vst.msk [vmem:[%s1350_s22 + $0x50] sm:$0xff] %vm755_vm1, %v727_v61  ;;  %v1076_v62 = vpop.f32.mrb[28].mxu0 }
 0x2b2   : > { %v742_v63 = vadd.f32 %v1076_v62, %v855_v37  ;;  %v736_v0 = vpop.f32.mrb[29].mxu0 }
 0x2b3   : > { %v737_v1 = vadd.f32 %v855_v37, %v736_v0 }
 0x2b4   : > { %769 = vst.msk [vmem:[%s1350_s22 + $0x68] sm:$0xff] %vm755_vm1, %v742_v63 }
 0x2b5   : > { %768 = vst.msk [vmem:[%s1350_s22 + $0x60] sm:$0xff] %vm755_vm1, %v737_v1  ;;  %v1079_v2 = vpop.f32.mrb[30].mxu0 }
 0x2b6   : > { %v752_v3 = vadd.f32 %v1079_v2, %v855_v37  ;;  %v746_v4 = vpop.f32.mrb[31].mxu0 }
 0x2b7   : > { %v747_v5 = vadd.f32 %v855_v37, %v746_v4 }
 0x2b8   : > { %771 = vst.msk [vmem:[%s1350_s22 + $0x78] sm:$0xff] %vm755_vm1, %v752_v3 }
 0x2b9   : > { %770 = vst.msk [vmem:[%s1350_s22 + $0x70] sm:$0xff] %vm755_vm1, %v747_v5 }
 0x2ba PF: > { %s13_s12 = sadd.s32 1, %s1162_s12  }
 0x2bb   : > { %p10_p4 = scmp.ge.s32.totalorder %s13_s12, 4  }
 0x2bd   :  { %12 = sbr.rel (!%p10_p4) target bundleno = 1 (0x1), region = 62 }

</bundles_post_ra>
